<compile_context>
chip_gen: v7x
topology: tpu7x:2x2x1
jax: 0.10.0
libtpu: 0.0.40
codegen_flags: <defaults>
</compile_context>

<pallas_src>
import functools

import jax
import jax.numpy as jnp
from jax.experimental import pallas as pl
from jax.experimental.pallas import tpu as pltpu

NEG_SLOPE = 0.01   # F.leaky_relu default negative_slope
LANE = 128         # last-dim tile (lanes) — output/feature dims
SUBLANE = 8        # second-to-last-dim tile (sublanes) for f32 activations
K_SUBLANE = 16     # bf16 sublane packing — contraction-dim padding multiple


def _round_up(x: int, m: int) -> int:
    return ((x + m - 1) // m) * m


def _mlp_kernel(*refs, batch: int, b_pad: int, in_f: int, k_pad0: int):
    """refs = (x_ref, w1_ref, b1_ref, ..., wN_ref, bN_ref, o_ref).

    All operands are full-array VMEM blocks; intermediates never touch HBM.
    Matmuls run on the MXU in bf16 with f32 accumulation; the epilogue
    (bias + leaky_relu) stays in f32 on the VPU.
    """
    x_ref = refs[0]
    o_ref = refs[-1]
    n_layers = (len(refs) - 2) // 2

    # Pad the activation to its aligned working shape inside the kernel
    # (zero padding is semantics-preserving: padded weight rows/cols and bias
    # lanes are 0 and leaky_relu(0) == 0).
    h = jnp.pad(x_ref[...], ((0, b_pad - batch), (0, k_pad0 - in_f)))

    for i in range(n_layers):
        w_ref = refs[1 + 2 * i]   # (k_pad_i, out_pad_i) bf16
        b_ref = refs[2 + 2 * i]   # (1, out_pad_i) f32
        k = w_ref.shape[0]        # true (sublane-padded) contraction depth
        h = jnp.dot(h[:, :k].astype(jnp.bfloat16), w_ref[...],
                    preferred_element_type=jnp.float32)
        h = h + b_ref[...]
        if i != n_layers - 1:     # last layer has no activation (matches SimpleNN)
            h = jnp.maximum(h, NEG_SLOPE * h)

    o_ref[...] = h.astype(o_ref.dtype)


def init_params(linear_sizes, key):
    """Deterministic init matching nn.Linear shapes: W (out, in), b (out,)."""
    params = []
    for i in range(len(linear_sizes) - 1):
        fan_in, fan_out = linear_sizes[i], linear_sizes[i + 1]
        key, kw, kb = jax.random.split(key, 3)
        bound = 1.0 / jnp.sqrt(fan_in)
        w = jax.random.uniform(kw, (fan_out, fan_in), jnp.float32, -bound, bound)
        b = jax.random.uniform(kb, (fan_out,), jnp.float32, -bound, bound)
        params.append((w, b))
    return params


def prepare_params(params):
    """One-time: transpose to (in, out), pad K to 16 / out to 128, cast W to bf16."""
    prepared = []
    for w, b in params:
        fan_out, fan_in = w.shape
        k_pad = _round_up(fan_in, K_SUBLANE)   # contraction dim: small multiple only
        out_pad = _round_up(fan_out, LANE)     # output dim: lane-dense (128)
        w_t = (jnp.zeros((k_pad, out_pad), jnp.bfloat16)
               .at[:fan_in, :fan_out].set(w.T.astype(jnp.bfloat16)))
        b_p = jnp.zeros((1, out_pad), jnp.float32).at[0, :fan_out].set(b)
        prepared.append((w_t, b_p))
    return prepared


@functools.partial(jax.jit, static_argnums=(2,))
def simple_nn_forward(x, prepared_params, out_features: int):
    """x: (B, in_features) f32 -> (B, out_features) f32, fused MLP."""
    n_layers = len(prepared_params)
    B, in_f = x.shape
    k_pad0 = prepared_params[0][0].shape[0]
    out_pad = prepared_params[-1][0].shape[1]
    b_pad = _round_up(B, SUBLANE)

    flat_inputs = [x]                      # unpadded; padded inside the kernel
    for w_t, b in prepared_params:
        flat_inputs += [w_t, b]

    # Advisory cost estimate for XLA's scheduler.
    flops = 2 * b_pad * sum(int(w.shape[0]) * int(w.shape[1])
                            for w, _ in prepared_params)
    bytes_accessed = (4 * x.size
                      + sum(2 * int(w.size) + 4 * int(b.size)
                            for w, b in prepared_params)
                      + 4 * b_pad * out_pad)

    kernel = functools.partial(_mlp_kernel, batch=B, b_pad=b_pad,
                               in_f=in_f, k_pad0=k_pad0)
    out_p = pl.pallas_call(
        kernel,
        out_shape=jax.ShapeDtypeStruct((b_pad, out_pad), x.dtype),
        in_specs=[pl.BlockSpec(memory_space=pltpu.MemorySpace.VMEM)]
        * (1 + 2 * n_layers),
        out_specs=pl.BlockSpec(memory_space=pltpu.MemorySpace.VMEM),
        cost_estimate=pl.CostEstimate(
            flops=flops, transcendentals=0, bytes_accessed=bytes_accessed),
    )(*flat_inputs)

    # TODO(synk): once batch grows (M >= 128/256), add a 1-D grid over batch
    # rows with dimension_semantics=("parallel",) (shards across v7x's 2 TCs),
    # keep weight BlockSpecs with constant index_maps so weights stay
    # VMEM-resident, and budget tiles against v7x's 64 MiB VMEM
    # (vmem_limit_bytes) rather than v5e/v6e's 128 MiB.
    return out_p[:B, :out_features]


if __name__ == "__main__":
    key = jax.random.PRNGKey(0)
    linear_sizes = [16, 32, 64, 8]  # 3 Linear layers: 16->32->64->8
    batch = 2

    k_in, k_p = jax.random.split(key)
    x = jax.random.normal(k_in, (batch, linear_sizes[0]), jnp.float32)
    params = init_params(linear_sizes, k_p)
    prepared = prepare_params(params)   # transpose + pad + bf16-cast once

    out = simple_nn_forward(x, prepared, linear_sizes[-1])
    jax.block_until_ready(out)

    # Same-precision reference (bf16 matmul inputs, f32 accumulate/epilogue).
    ref = x
    for ind, (w, b) in enumerate(params):
        ref = jnp.dot(ref.astype(jnp.bfloat16), w.T.astype(jnp.bfloat16),
                      preferred_element_type=jnp.float32) + b
        if ind != len(params) - 1:
            ref = jnp.maximum(ref, NEG_SLOPE * ref)

    # Pure-f32 reference (the original module semantics) as loose sanity,
    # tolerance relaxed for the bf16 weight storage.
    ref32 = x
    for ind, (w, b) in enumerate(params):
        ref32 = ref32 @ w.T + b
        if ind != len(params) - 1:
            ref32 = jnp.where(ref32 >= 0, ref32, NEG_SLOPE * ref32)

    assert out.shape == (batch, linear_sizes[-1])
    assert jnp.allclose(out, ref, atol=1e-3, rtol=1e-3)
    assert jnp.allclose(out, ref32, atol=5e-2, rtol=5e-2)

    print("KERNEL_OK")
</pallas_src>

<mosaic_0001>
module attributes {stable_mosaic.version = 11 : i64} {
  func.func @_mlp_kernel(%arg0: memref<2x16xf32, #tpu.memory_space<vmem>>, %arg1: memref<16x128xbf16, #tpu.memory_space<vmem>>, %arg2: memref<1x128xf32, #tpu.memory_space<vmem>>, %arg3: memref<32x128xbf16, #tpu.memory_space<vmem>>, %arg4: memref<1x128xf32, #tpu.memory_space<vmem>>, %arg5: memref<64x128xbf16, #tpu.memory_space<vmem>>, %arg6: memref<1x128xf32, #tpu.memory_space<vmem>>, %arg7: memref<8x128xf32, #tpu.memory_space<vmem>>) attributes {dimension_semantics = [], scalar_prefetch = 0 : i64, scratch_operands = 0 : i64, tpu.core_type = #tpu.core_type<tc>} {
    %c0 = arith.constant 0 : index
    %c0_0 = arith.constant 0 : index
    %0 = vector.load %arg0[%c0, %c0_0] : memref<2x16xf32, #tpu.memory_space<vmem>>, vector<2x16xf32>
    %c0_i32 = arith.constant 0 : i32
    %1 = arith.sitofp %c0_i32 : i32 to f32
    %2 = vector.broadcast %1 : f32 to vector<6x16xf32>
    %3 = tpu.concatenate %0, %2 in 0 : vector<2x16xf32>, vector<6x16xf32> -> vector<8x16xf32>
    %4 = arith.truncf %3 : vector<8x16xf32> to vector<8x16xbf16>
    %c0_1 = arith.constant 0 : index
    %c0_2 = arith.constant 0 : index
    %5 = vector.load %arg1[%c0_1, %c0_2] : memref<16x128xbf16, #tpu.memory_space<vmem>>, vector<16x128xbf16>
    %cst = arith.constant dense<0.000000e+00> : vector<8x128xf32>
    %6 = tpu.matmul %4, %5, %cst {dimension_numbers = #tpu.dot_dimension_numbers<[1], [0], [0], [1], [0, 0, 1, 1], [], []>} : vector<8x16xbf16>, vector<16x128xbf16>, vector<8x128xf32> -> vector<8x128xf32>
    %c0_3 = arith.constant 0 : index
    %c0_4 = arith.constant 0 : index
    %7 = vector.load %arg2[%c0_3, %c0_4] : memref<1x128xf32, #tpu.memory_space<vmem>>, vector<1x128xf32>
    %8 = vector.broadcast %7 : vector<1x128xf32> to vector<8x128xf32>
    %9 = arith.addf %6, %8 : vector<8x128xf32>
    %cst_5 = arith.constant 0.00999999977 : f32
    %10 = vector.broadcast %cst_5 : f32 to vector<8x128xf32>
    %11 = arith.mulf %10, %9 : vector<8x128xf32>
    %12 = arith.maximumf %9, %11 : vector<8x128xf32>
    %13 = vector.extract_strided_slice %12 {offsets = [0, 0], sizes = [8, 32], strides = [1, 1]} : vector<8x128xf32> to vector<8x32xf32>
    %14 = arith.truncf %13 : vector<8x32xf32> to vector<8x32xbf16>
    %c0_6 = arith.constant 0 : index
    %c0_7 = arith.constant 0 : index
    %15 = vector.load %arg3[%c0_6, %c0_7] : memref<32x128xbf16, #tpu.memory_space<vmem>>, vector<32x128xbf16>
    %cst_8 = arith.constant dense<0.000000e+00> : vector<8x128xf32>
    %16 = tpu.matmul %14, %15, %cst_8 {dimension_numbers = #tpu.dot_dimension_numbers<[1], [0], [0], [1], [0, 0, 1, 1], [], []>} : vector<8x32xbf16>, vector<32x128xbf16>, vector<8x128xf32> -> vector<8x128xf32>
    %c0_9 = arith.constant 0 : index
    %c0_10 = arith.constant 0 : index
    %17 = vector.load %arg4[%c0_9, %c0_10] : memref<1x128xf32, #tpu.memory_space<vmem>>, vector<1x128xf32>
    %18 = vector.broadcast %17 : vector<1x128xf32> to vector<8x128xf32>
    %19 = arith.addf %16, %18 : vector<8x128xf32>
    %cst_11 = arith.constant 0.00999999977 : f32
    %20 = vector.broadcast %cst_11 : f32 to vector<8x128xf32>
    %21 = arith.mulf %20, %19 : vector<8x128xf32>
    %22 = arith.maximumf %19, %21 : vector<8x128xf32>
    %23 = vector.extract_strided_slice %22 {offsets = [0, 0], sizes = [8, 64], strides = [1, 1]} : vector<8x128xf32> to vector<8x64xf32>
    %24 = arith.truncf %23 : vector<8x64xf32> to vector<8x64xbf16>
    %c0_12 = arith.constant 0 : index
    %c0_13 = arith.constant 0 : index
    %25 = vector.load %arg5[%c0_12, %c0_13] : memref<64x128xbf16, #tpu.memory_space<vmem>>, vector<64x128xbf16>
    %cst_14 = arith.constant dense<0.000000e+00> : vector<8x128xf32>
    %26 = tpu.matmul %24, %25, %cst_14 {dimension_numbers = #tpu.dot_dimension_numbers<[1], [0], [0], [1], [0, 0, 1, 1], [], []>} : vector<8x64xbf16>, vector<64x128xbf16>, vector<8x128xf32> -> vector<8x128xf32>
    %c0_15 = arith.constant 0 : index
    %c0_16 = arith.constant 0 : index
    %27 = vector.load %arg6[%c0_15, %c0_16] : memref<1x128xf32, #tpu.memory_space<vmem>>, vector<1x128xf32>
    %28 = vector.broadcast %27 : vector<1x128xf32> to vector<8x128xf32>
    %29 = arith.addf %26, %28 : vector<8x128xf32>
    %c0_17 = arith.constant 0 : index
    %c0_18 = arith.constant 0 : index
    %30 = vector.load %arg7[%c0_17, %c0_18] : memref<8x128xf32, #tpu.memory_space<vmem>>, vector<8x128xf32>
    tpu.vector_store %arg7[%c0_17, %c0_18], %29 {strides = array<i32>} : memref<8x128xf32, #tpu.memory_space<vmem>>, vector<8x128xf32>,
    return
  }
}

</mosaic_0001>

<bundles_post_ra>
// kernel: simple_nn_forward.1
= control target key start
LH: loop header
LB: loop body
LE: loop exit
PB: predicated region body
PF: predicated region fallthrough
CT: control target
= control target key end

     0   :  { %12 = vsyncpa [#allocation3], 0  ;;  %s582_s0 = inlined_call_operand.hbm [shape: f32[2,16], index: 0, kind: input, shape index: {}]   ;;  %s583_s1 = inlined_call_operand.hbm [shape: bf16[16,128], index: 1, kind: input, shape index: {}]   ;;  %s584_s2 = inlined_call_operand.vmem [shape: f32[1,128], index: 2, kind: input, shape index: {}]   ;;  %s585_s3 = inlined_call_operand.hbm [shape: bf16[32,128], index: 3, kind: input, shape index: {}]   ;;  %s586_s4 = inlined_call_operand.vmem [shape: f32[1,128], index: 4, kind: input, shape index: {}]   ;;  %s587_s5 = inlined_call_operand.hbm [shape: bf16[64,128], index: 5, kind: input, shape index: {}]   ;;  %s588_s6 = inlined_call_operand.vmem [shape: f32[1,128], index: 6, kind: input, shape index: {}]   ;;  %s589_s7 = inlined_call_operand.vmem [shape: f32[8,128], index: 7, kind: output, shape index: {}]  }
   0x1   :  { %13 = vsyncpa [#allocation5], 0 }
   0x2   :  { %14 = vsyncpa [#allocation8], 0  ;;  %s465_s24 = smov [#allocation4]   ;;  %s371_s28 = scalar_lea.hbm %s583_s1, 128 }
   0x3   :  { %s30_s25 = sshll.u32 %s465_s24, 4  ;;  %p372_p0 = scmp.ne.s32.totalorder %s583_s1, %s371_s28  ;;  %s31_s25 = int_to_ptr.vmem [resolvable:$true] %s30_s25 }
   0x4   :  { %p375_p1 = scmp.lt.u32.totalorder %s371_s28, %s583_s1 }
   0x6   :  { %p377_p2 = pnand %p375_p1, %p372_p0 }
   0x8   :  { %380 = shalt.err (!%p377_p2)
}
   0x9   :  { %s381_s10 = scalar_lea.vmem %s31_s25, 128  ;;  %p386_p4 = scmp.lt.s32.totalorder %s31_s25, %s31_s25 }
   0xa   :  { %p382_p3 = scmp.ne.s32.totalorder %s31_s25, %s381_s10  ;;  %p387_p5 = scmp.lt.s32.totalorder %s381_s10, %s381_s10 }
   0xc   :  { %p388_p6 = por %p387_p5, %p386_p4 }
   0xe   :  { %p389_p7 = pnand %p388_p6, %p382_p3 }
  0x10   :  { %392 = shalt.err (!%p389_p7)
}
  0x11   :  { %s466_s11 = smov 64   ;;  %s467_s12 = smov 4  }
  0x12   :  { %36 = dma.hbm_to_vmem [thread:$0]  %s583_s1, 128, %s31_s25, [#allocation5], %s466_s11, %s466_s11, %s467_s12  }
  0x13   :  { %s468_s15 = smov [#allocation2]   ;;  %s469_s17 = smov [#allocation6]  }
  0x14   :  { %s21_s16 = sshll.u32 %s468_s15, 4  ;;  %s44_s18 = sshll.u32 %s469_s17, 4  ;;  %s22_s16 = int_to_ptr.vmem [resolvable:$true] %s21_s16  ;;  %s45_s18 = int_to_ptr.vmem [resolvable:$true] %s44_s18 }
  0x15   :  { %s393_s21 = scalar_lea.hbm %s582_s0, 32 }
  0x16   :  { %p394_p8 = scmp.ne.s32.totalorder %s582_s0, %s393_s21  ;;  %p397_p9 = scmp.lt.u32.totalorder %s393_s21, %s582_s0 }
  0x18   :  { %p399_p10 = pnand %p397_p9, %p394_p8 }
  0x1a   :  { %402 = shalt.err (!%p399_p10)
}
  0x1b   :  { %s403_s1 = scalar_lea.vmem %s22_s16, 32  ;;  %p408_p12 = scmp.lt.s32.totalorder %s22_s16, %s22_s16 }
  0x1c   :  { %p404_p11 = scmp.ne.s32.totalorder %s22_s16, %s403_s1  ;;  %p409_p13 = scmp.lt.s32.totalorder %s403_s1, %s403_s1 }
  0x1e   :  { %p410_p0 = por %p409_p13, %p408_p12 }
  0x20   :  { %p411_p1 = pnand %p410_p0, %p404_p11 }
  0x22   :  { %414 = shalt.err (!%p411_p1)
}
  0x23   :  { %24 = dma.hbm_to_vmem [thread:$0]  %s582_s0, 32, %s22_s16, [#allocation3]  }
  0x24   :  { %s415_s30 = scalar_lea.hbm %s585_s3, 256 }
  0x25   :  { %p416_p2 = scmp.ne.s32.totalorder %s585_s3, %s415_s30  ;;  %p419_p3 = scmp.lt.u32.totalorder %s415_s30, %s585_s3 }
  0x27   :  { %p421_p4 = pnand %p419_p3, %p416_p2 }
  0x29   :  { %424 = shalt.err (!%p421_p4)
}
  0x2a   :  { %s425_s14 = scalar_lea.vmem %s45_s18, 256  ;;  %p430_p6 = scmp.lt.s32.totalorder %s45_s18, %s45_s18 }
  0x2b   :  { %p426_p5 = scmp.ne.s32.totalorder %s45_s18, %s425_s14  ;;  %p431_p7 = scmp.lt.s32.totalorder %s425_s14, %s425_s14 }
  0x2d   :  { %p432_p8 = por %p431_p7, %p430_p6 }
  0x2f   :  { %p433_p9 = pnand %p432_p8, %p426_p5 }
  0x31   :  { %436 = shalt.err (!%p433_p9)
}
  0x32   :  { %50 = dma.hbm_to_vmem [thread:$0]  %s585_s3, 256, %s45_s18, [#allocation5], %s466_s11, %s466_s11, %s467_s12  }
  0x33   :  { %s470_s16 = smov [#allocation7]   ;;  %s437_s21 = scalar_lea.hbm %s587_s5, 512 }
  0x34   :  { %s58_s17 = sshll.u32 %s470_s16, 4  ;;  %p438_p10 = scmp.ne.s32.totalorder %s587_s5, %s437_s21  ;;  %s59_s17 = int_to_ptr.vmem [resolvable:$true] %s58_s17 }
  0x35   :  { %p441_p11 = scmp.lt.u32.totalorder %s437_s21, %s587_s5 }
  0x37   :  { %p443_p12 = pnand %p441_p11, %p438_p10 }
  0x39   :  { %446 = shalt.err (!%p443_p12)
}
  0x3a   :  { %s447_s1 = scalar_lea.vmem %s59_s17, 512  ;;  %p452_p0 = scmp.lt.s32.totalorder %s59_s17, %s59_s17 }
  0x3b   :  { %p448_p13 = scmp.ne.s32.totalorder %s59_s17, %s447_s1  ;;  %p453_p1 = scmp.lt.s32.totalorder %s447_s1, %s447_s1 }
  0x3d   :  { %p454_p2 = por %p453_p1, %p452_p0 }
  0x3f   :  { %p455_p3 = pnand %p454_p2, %p448_p13 }
  0x41   :  { %458 = shalt.err (!%p455_p3)
}
  0x42   :  { %64 = dma.hbm_to_vmem [thread:$0]  %s587_s5, 512, %s59_s17, [#allocation8], %s466_s11, %s466_s11, %s467_s12  }
  0x43   :  { %459 = dma.done.wait [#allocation3], 32  }
  0x44   :  { %460 = vsyncadd [#allocation3], 4294967264 }
  0x45   :  { %461 = dma.done.wait [#allocation5], 384  }
  0x46   :  { %462 = vsyncadd [#allocation5], 4294966912 }
  0x47   :  { %463 = dma.done.wait [#allocation8], 512  }
  0x48   :  { %464 = vsyncadd [#allocation8], 4294966784  ;;  %v471_v0 = vmov 0.0   ;;  %vm472_vm0 = vmmov 0   ;;  %vm81_vm1 = vcmask 1041408   ;;  %v364_v1 = vld [vmem:[#allocation4] sm:$0xff]  }
  0x49   :  { %330 = vmatprep.subr.bf16.mxu1 %v471_v0  ;;  %332 = vmatprep.mubr.msk.bf16.mxu1 %vm472_vm0, %v471_v0  ;;  %v80_v2 = vld [vmem:[#allocation2] sm:$0x3]  ;;  %vm99_vm2 = vcmask 130048   ;;  %v365_v5 = vld [vmem:[#allocation6] sm:$0xff]   ;;  %v366_v6 = vld [vmem:[#allocation6 + $0x8] sm:$0xff]   ;;  %vm169_vm3 = vcmask 261120  }
  0x4a   :  { %344 = vmatprep.subr.bf16.mxu0 %v471_v0  ;;  %352 = vmatprep.mubr.msk.bf16.mxu0 %vm472_vm0, %v471_v0  ;;  %v82_v3 = vsel %vm81_vm1, %v80_v2, 0.0  ;;  %v367_v7 = vld [vmem:[#allocation7] sm:$0xff]   ;;  %v368_v8 = vld [vmem:[#allocation7 + $0x8] sm:$0xff]   ;;  %v369_v18 = vld [vmem:[#allocation7 + $0x10] sm:$0xff]   ;;  %vm255_vm4 = vcmask 523264  }
  0x4b   :  { %331 = vmatpush3.bf16.msra.mxu1 %v364_v1  ;;  %v83_v4 = vpack.c.bf16 %v82_v3, %v82_v3  ;;  %345 = vmatpush3.bf16.msra.mxu0 %v367_v7  ;;  %v307_v9 = vld [vmem:[%s584_s2] ss:$0 sm:$0xff]  ;;  %v370_v19 = vld [vmem:[#allocation7 + $0x18] sm:$0xff]  }
  0x4c   :  { %336 = vmatprep.subr.bf16.mxu1 %v471_v0  ;;  %346 = vmatprep.subr.bf16.mxu0 %v471_v0  ;;  %v310_v20 = vld [vmem:[%s586_s4] ss:$0 sm:$0xff] }
  0x4d   :  { %v314_v29 = vld [vmem:[%s588_s6] ss:$0 sm:$0xff] }
  0x4e   :  { %333 = vmatmul.mubr.msk.bf16.vlgmr.msra.gmra.mrb[0].mxu1 %vm99_vm2, %v83_v4 }
  0x4f   :  { %340 = vmatprep.mubr.msk.bf16.mxu1 %vm472_vm0, %v471_v0  ;;  %337 = vmatpush3.bf16.msra.mxu1 %v365_v5 }
  0x50   :  { %338 = vmatprep.subr.bf16.mxu1 %v471_v0  ;;  %347 = vmatpush3.bf16.msra.mxu0 %v368_v8 }
  0x51   :  { %348 = vmatprep.subr.bf16.mxu0 %v471_v0 }
  0x53   :  { %339 = vmatpush3.bf16.msra.mxu1 %v366_v6 }
  0x54   :  { %349 = vmatpush3.bf16.msra.mxu0 %v369_v18 }
  0x55   :  { %350 = vmatprep.subr.bf16.mxu0 %v471_v0 }
  0x58   :  { %351 = vmatpush3.bf16.msra.mxu0 %v370_v19 }
 0x121   :  { %v137_v10 = vpop.f32.mrb[0].mxu1 }
 0x122   :  { %v138_v11 = vadd.f32 %v307_v9, %v137_v10  ;;  %v334_v12 = vpop.f32.mrb[1].mxu1 }
 0x123   :  { %v140_v13 = vpop.f32.mrb[2].mxu1 }
 0x124   :  { %v143_v14 = vmul.f32 0.01, %v138_v11  ;;  %v335_v15 = vpop.f32.mrb[3].mxu1 }
 0x126   :  { %v144_v16 = vmax.f32 %v138_v11, %v143_v14 }
 0x128   :  { %v145_v17 = vpack.c.bf16 %v144_v16, %v144_v16 }
 0x12a   :  { %341 = vmatmul.mubr.msk.bf16.vlgmr.msra.gmra.mrb[4].mxu1 %vm169_vm3, %v145_v17 }
 0x1fd   :  { %v207_v21 = vpop.f32.mrb[4].mxu1 }
 0x1fe   :  { %v208_v22 = vadd.f32 %v310_v20, %v207_v21  ;;  %v342_v23 = vpop.f32.mrb[5].mxu1 }
 0x1ff   :  { %v210_v24 = vpop.f32.mrb[6].mxu1 }
 0x200   :  { %v213_v25 = vmul.f32 0.01, %v208_v22  ;;  %v343_v26 = vpop.f32.mrb[7].mxu1 }
 0x202   :  { %v214_v27 = vmax.f32 %v208_v22, %v213_v25 }
 0x204   :  { %v215_v28 = vpack.c.bf16 %v214_v27, %v214_v27 }
 0x206   :  { %353 = vmatmul.mubr.msk.bf16.vlgmr.msra.gmra.mrb[0].mxu0 %vm255_vm4, %v215_v28 }
 0x2d9   :  { %v293_v30 = vpop.f32.mrb[0].mxu0 }
 0x2da   :  { %v294_v31 = vadd.f32 %v314_v29, %v293_v30  ;;  %v354_v32 = vpop.f32.mrb[1].mxu0 }
 0x2db   :  { %v296_v33 = vpop.f32.mrb[2].mxu0 }
 0x2dc   :  { %299 = vst [vmem:[%s589_s7] sm:$0xff] %v294_v31  ;;  %v355_v34 = vpop.f32.mrb[3].mxu0 }
 0x2dd   :  { %304 = vsyncpa [#allocation3], 1 }
 0x2de   :  { %305 = vsyncpa [#allocation5], 1 }
 0x2df   :  { %306 = vsyncpa [#allocation8], 1 }

</bundles_post_ra>
